<compile_context>
chip_gen: v6e
topology: v6e:2x2x1
jax: 0.10.0
libtpu: 0.0.40
codegen_flags: <defaults>
</compile_context>

<pallas_src>
import functools
import math

import numpy as np
import jax
import jax.numpy as jnp
from jax.experimental import pallas as pl
from jax.experimental.pallas import tpu as pltpu

FFT_SIZE = 512
MEL_SCALES = [16, 32, 64]
NUM_BINS = FFT_SIZE // 2 + 1          # 257
TOTAL_MEL = sum(MEL_SCALES)           # 112
NUM_SCALES = len(MEL_SCALES)          # 3
_K_MAIN = 256                         # MXU-aligned portion of the 257-bin axis


# ---------------------------------------------------------------------------
# Mel filterbank construction (exact port of the reference numpy code).
# ---------------------------------------------------------------------------
def freqToMel(freq):
    return 1127.01048 * math.log(1 + freq / 700.0)


def melToFreq(mel):
    return 700 * (math.exp(mel / 1127.01048) - 1)


def melFilterBank(numCoeffs, fftSize=None, fs=16000, win_len=400):
    minHz = 0
    maxHz = fs / 2
    if fftSize is None:
        numFFTBins = win_len
    else:
        numFFTBins = int(fftSize / 2) + 1
    maxMel = freqToMel(maxHz)
    minMel = freqToMel(minHz)
    melRange = np.array(range(numCoeffs + 2)).astype(np.float32)
    melCenterFilters = melRange * (maxMel - minMel) / (numCoeffs + 1) + minMel
    for i in range(numCoeffs + 2):
        melCenterFilters[i] = melToFreq(melCenterFilters[i])
        melCenterFilters[i] = math.floor(numFFTBins * melCenterFilters[i] / maxHz)
    filterMat = np.zeros((numCoeffs, numFFTBins))
    for i in range(1, numCoeffs + 1):
        filt = np.zeros(numFFTBins)
        startRange = int(melCenterFilters[i - 1])
        midRange = int(melCenterFilters[i])
        endRange = int(melCenterFilters[i + 1])
        for j in range(startRange, midRange):
            filt[j] = (float(j) - startRange) / (midRange - startRange)
        for j in range(midRange, endRange):
            filt[j] = 1 - (float(j) - midRange) / (endRange - midRange)
        filterMat[i - 1] = filt
    return filterMat


def build_constants():
    """Concatenated filterbank with 1/FFT_SIZE folded in, plus the per-scale
    reduction weight matrix (1/scale on each scale's column segment)."""
    fbs = [melFilterBank(s, FFT_SIZE).transpose().astype(np.float32)
           for s in MEL_SCALES]                                  # each (257, s)
    fb_cat = (np.concatenate(fbs, axis=1) / FFT_SIZE).astype(np.float32)  # (257,112)
    offsets = np.cumsum([0] + MEL_SCALES)
    w = np.zeros((TOTAL_MEL, NUM_SCALES), np.float32)            # (112, 3)
    for i, s in enumerate(MEL_SCALES):
        w[offsets[i]:offsets[i + 1], i] = 1.0 / float(s)
    return fb_cat, w


def _round_up(x, m):
    return ((x + m - 1) // m) * m


# ---------------------------------------------------------------------------
# Pallas kernel: mel matmul, log, per-scale RMSE partial sums (one row tile).
# ---------------------------------------------------------------------------
def _perceptual_distance_kernel(yt_ref, yp_ref, fb_ref, w_ref, out_ref,
                                *, n_valid_rows):
    # yt_ref/yp_ref: (T, 257)  power spectra (1/FFT_SIZE folded into fb)
    # fb_ref       : (257, 112) scaled mel filterbank (resident)
    # w_ref        : (112, 3)   per-scale 1/scale reduction weights (resident)
    # out_ref      : (1, 1, 1)  per-tile partial sum of sqrt(mse + eps)

    fb_main = fb_ref[:_K_MAIN, :]              # (256, 112)  MXU-aligned K
    fb_last = fb_ref[_K_MAIN:_K_MAIN + 1, :]   # (1, 112)    bin-256 row

    yt_main = yt_ref[:, :_K_MAIN]              # (T, 256)
    yp_main = yp_ref[:, :_K_MAIN]
    yt_last = yt_ref[:, _K_MAIN:_K_MAIN + 1]   # (T, 1)
    yp_last = yp_ref[:, _K_MAIN:_K_MAIN + 1]

    # K=256 on the MXU + rank-1 VPU correction for the ragged 257th bin.
    ft = jnp.dot(yt_main, fb_main, preferred_element_type=jnp.float32)
    ft = ft + yt_last * fb_last                # (T, 112)
    fp = jnp.dot(yp_main, fb_main, preferred_element_type=jnp.float32)
    fp = fp + yp_last * fb_last                # (T, 112)

    d2 = (jnp.log(fp + 1e-7) - jnp.log(ft + 1e-7)) ** 2          # (T, 112)

    # Per-scale MSE for all three scales in one small MXU matmul.
    mse = jnp.dot(d2, w_ref[...], preferred_element_type=jnp.float32)  # (T, 3)
    r = jnp.sqrt(mse + 1e-7)                                           # (T, 3)

    # Mask out zero-padded rows of the last tile.
    tile_rows = r.shape[0]
    row0 = pl.program_id(0) * tile_rows
    rows = row0 + jax.lax.broadcasted_iota(jnp.int32, r.shape, 0)
    r = jnp.where(rows < n_valid_rows, r, 0.0)

    out_ref[0] = jnp.sum(r, keepdims=True)     # (1, 1) partial sum


def perceptual_distance(y_true, y_pred, fb_scaled, w_scales, *, tile_rows=1024):
    yt = jnp.asarray(y_true, jnp.float32).reshape(-1, NUM_BINS)
    yp = jnp.asarray(y_pred, jnp.float32).reshape(-1, NUM_BINS)
    n = yt.shape[0]

    # Row tile: multiple of 8 sublanes, capped at tile_rows (VMEM budget).
    t = min(_round_up(tile_rows, 8), _round_up(n, 8))
    n_pad = _round_up(n, t)
    if n_pad != n:
        pad = ((0, n_pad - n), (0, 0))
        yt = jnp.pad(yt, pad)      # zero rows -> well-defined, masked in kernel
        yp = jnp.pad(yp, pad)
    num_tiles = n_pad // t

    kernel = functools.partial(_perceptual_distance_kernel, n_valid_rows=n)

    partials = pl.pallas_call(
        kernel,
        out_shape=jax.ShapeDtypeStruct((num_tiles, 1, 1), jnp.float32),
        grid=(num_tiles,),
        in_specs=[
            pl.BlockSpec((t, NUM_BINS), lambda i: (i, 0)),
            pl.BlockSpec((t, NUM_BINS), lambda i: (i, 0)),
            pl.BlockSpec((NUM_BINS, TOTAL_MEL), lambda i: (0, 0)),      # resident
            pl.BlockSpec((TOTAL_MEL, NUM_SCALES), lambda i: (0, 0)),    # resident
        ],
        out_specs=pl.BlockSpec((1, 1, 1), lambda i: (i, 0, 0)),
        compiler_params=pltpu.CompilerParams(
            dimension_semantics=("parallel",),
            vmem_limit_bytes=32 * 1024 * 1024,
        ),
    )(yt, yp, fb_scaled, w_scales)

    # mean over 3 scales of (mean over N rows of sqrt(mse)) == sum / (3*N).
    return jnp.sum(partials) / (float(NUM_SCALES) * float(n))


# ---------------------------------------------------------------------------
# Pure-JAX reference (mirrors the PyTorch module) for validation.
# ---------------------------------------------------------------------------
def _reference(y_true, y_pred, fb_list):
    yt = y_true.reshape(-1, NUM_BINS).astype(jnp.float32) / FFT_SIZE
    yp = y_pred.reshape(-1, NUM_BINS).astype(jnp.float32) / FFT_SIZE
    errs = []
    for fb in fb_list:
        lt = jnp.log(yt @ fb + 1e-7)
        lp = jnp.log(yp @ fb + 1e-7)
        mse = jnp.mean((lp - lt) ** 2, axis=-1)
        errs.append(jnp.mean(jnp.sqrt(mse + 1e-7)))
    return jnp.mean(jnp.stack(errs))


if __name__ == "__main__":
    fb_scaled_np, w_np = build_constants()
    fb_scaled = jnp.asarray(fb_scaled_np)
    w_scales = jnp.asarray(w_np)

    fb_list = [jnp.asarray(melFilterBank(s, FFT_SIZE).transpose().astype(np.float32))
               for s in MEL_SCALES]

    key = jax.random.PRNGKey(0)
    k1, k2 = jax.random.split(key)
    # Power-spectrum-like (non-negative) inputs: batch=2, frames=9, bins=257.
    # 2*9 = 18 rows (not a multiple of 8) exercises the padded-row masking.
    y_true = jax.random.uniform(k1, (2, 9, NUM_BINS), jnp.float32) + 0.01
    y_pred = jax.random.uniform(k2, (2, 9, NUM_BINS), jnp.float32) + 0.01

    loss = jax.block_until_ready(
        perceptual_distance(y_true, y_pred, fb_scaled, w_scales))
    ref = jax.block_until_ready(_reference(y_true, y_pred, fb_list))

    # Tolerance allows for MXU default-precision accumulation differences
    # between the restructured in-kernel reductions and the XLA reference.
    assert np.allclose(np.asarray(loss), np.asarray(ref), rtol=2e-4, atol=1e-5), \
        (loss, ref)
    print("KERNEL_OK")
</pallas_src>

<mosaic_0001>
module attributes {stable_mosaic.version = 11 : i64} {
  func.func @_perceptual_distance_kernel(%arg0: i32, %arg1: memref<24x257xf32, #tpu.memory_space<vmem>>, %arg2: memref<24x257xf32, #tpu.memory_space<vmem>>, %arg3: memref<257x112xf32, #tpu.memory_space<vmem>>, %arg4: memref<112x3xf32, #tpu.memory_space<vmem>>, %arg5: memref<1x1x1xf32, #tpu.memory_space<vmem>>) attributes {dimension_semantics = [#tpu.dimension_semantics<parallel>], iteration_bounds = array<i64: 1>, scalar_prefetch = 0 : i64, scratch_operands = 0 : i64, tpu.core_type = #tpu.core_type<tc>, window_params = [{transform_indices = @transform_0, window_bounds = array<i64: 24, 257>}, {transform_indices = @transform_1, window_bounds = array<i64: 24, 257>}, {pipeline_mode = #tpu.pipeline_mode<synchronous>, transform_indices = @transform_2, window_bounds = array<i64: 257, 112>}, {pipeline_mode = #tpu.pipeline_mode<synchronous>, transform_indices = @transform_3, window_bounds = array<i64: 112, 3>}, {transform_indices = @transform_4, window_bounds = array<i64: 1, 1, 1>}]} {
    %c0 = arith.constant 0 : index
    %c0_0 = arith.constant 0 : index
    %0 = vector.load %arg3[%c0, %c0_0] : memref<257x112xf32, #tpu.memory_space<vmem>>, vector<256x112xf32>
    %c256 = arith.constant 256 : index
    %c0_1 = arith.constant 0 : index
    %1 = vector.load %arg3[%c256, %c0_1] : memref<257x112xf32, #tpu.memory_space<vmem>>, vector<1x112xf32>
    %c0_2 = arith.constant 0 : index
    %c0_3 = arith.constant 0 : index
    %2 = vector.load %arg1[%c0_2, %c0_3] : memref<24x257xf32, #tpu.memory_space<vmem>>, vector<24x256xf32>
    %c0_4 = arith.constant 0 : index
    %c0_5 = arith.constant 0 : index
    %3 = vector.load %arg2[%c0_4, %c0_5] : memref<24x257xf32, #tpu.memory_space<vmem>>, vector<24x256xf32>
    %c0_6 = arith.constant 0 : index
    %c256_7 = arith.constant 256 : index
    %4 = vector.load %arg1[%c0_6, %c256_7] : memref<24x257xf32, #tpu.memory_space<vmem>>, vector<24x1xf32>
    %c0_8 = arith.constant 0 : index
    %c256_9 = arith.constant 256 : index
    %5 = vector.load %arg2[%c0_8, %c256_9] : memref<24x257xf32, #tpu.memory_space<vmem>>, vector<24x1xf32>
    %cst = arith.constant dense<0.000000e+00> : vector<24x112xf32>
    %6 = tpu.matmul %2, %0, %cst {dimension_numbers = #tpu.dot_dimension_numbers<[1], [0], [0], [1], [0, 0, 1, 1], [], []>} : vector<24x256xf32>, vector<256x112xf32>, vector<24x112xf32> -> vector<24x112xf32>
    %7 = vector.broadcast %4 : vector<24x1xf32> to vector<24x112xf32>
    %8 = vector.broadcast %1 : vector<1x112xf32> to vector<24x112xf32>
    %9 = arith.mulf %7, %8 : vector<24x112xf32>
    %10 = arith.addf %6, %9 : vector<24x112xf32>
    %cst_10 = arith.constant dense<0.000000e+00> : vector<24x112xf32>
    %11 = tpu.matmul %3, %0, %cst_10 {dimension_numbers = #tpu.dot_dimension_numbers<[1], [0], [0], [1], [0, 0, 1, 1], [], []>} : vector<24x256xf32>, vector<256x112xf32>, vector<24x112xf32> -> vector<24x112xf32>
    %12 = vector.broadcast %5 : vector<24x1xf32> to vector<24x112xf32>
    %13 = vector.broadcast %1 : vector<1x112xf32> to vector<24x112xf32>
    %14 = arith.mulf %12, %13 : vector<24x112xf32>
    %15 = arith.addf %11, %14 : vector<24x112xf32>
    %cst_11 = arith.constant 1.000000e-07 : f32
    %16 = vector.broadcast %cst_11 : f32 to vector<24x112xf32>
    %17 = arith.addf %15, %16 : vector<24x112xf32>
    %18 = math.log %17 : vector<24x112xf32>
    %cst_12 = arith.constant 1.000000e-07 : f32
    %19 = vector.broadcast %cst_12 : f32 to vector<24x112xf32>
    %20 = arith.addf %10, %19 : vector<24x112xf32>
    %21 = math.log %20 : vector<24x112xf32>
    %22 = arith.subf %18, %21 : vector<24x112xf32>
    %23 = arith.mulf %22, %22 : vector<24x112xf32>
    %c0_13 = arith.constant 0 : index
    %c0_14 = arith.constant 0 : index
    %24 = vector.load %arg4[%c0_13, %c0_14] : memref<112x3xf32, #tpu.memory_space<vmem>>, vector<112x3xf32>
    %cst_15 = arith.constant dense<0.000000e+00> : vector<24x3xf32>
    %25 = tpu.matmul %23, %24, %cst_15 {dimension_numbers = #tpu.dot_dimension_numbers<[1], [0], [0], [1], [0, 0, 1, 1], [], []>} : vector<24x112xf32>, vector<112x3xf32>, vector<24x3xf32> -> vector<24x3xf32>
    %cst_16 = arith.constant 1.000000e-07 : f32
    %26 = vector.broadcast %cst_16 : f32 to vector<24x3xf32>
    %27 = arith.addf %25, %26 : vector<24x3xf32>
    %28 = math.sqrt %27 : vector<24x3xf32>
    %c24_i32 = arith.constant 24 : i32
    %29 = arith.muli %arg0, %c24_i32 : i32
    %30 = tpu.iota {dimensions = array<i32: 0>} : vector<24x3xi32>
    %31 = vector.broadcast %29 : i32 to vector<24x3xi32>
    %32 = arith.addi %31, %30 : vector<24x3xi32>
    %c18_i32 = arith.constant 18 : i32
    %33 = vector.broadcast %c18_i32 : i32 to vector<24x3xi32>
    %34 = arith.cmpi slt, %32, %33 : vector<24x3xi32>
    %cst_17 = arith.constant 0.000000e+00 : f32
    %35 = vector.broadcast %cst_17 : f32 to vector<24x3xf32>
    %36 = arith.select %34, %28, %35 : vector<24x3xi1>, vector<24x3xf32>
    %37 = vector.shape_cast %36 : vector<24x3xf32> to vector<1x24x3xf32>
    %cst_18 = arith.constant dense<0.000000e+00> : vector<1xf32>
    %38 = vector.multi_reduction <add>, %37, %cst_18 [1, 2] : vector<1x24x3xf32> to vector<1xf32>
    %39 = vector.shape_cast %38 : vector<1xf32> to vector<1x1x1xf32>
    %40 = vector.extract %39[0, 0, 0] : f32 from vector<1x1x1xf32>
    %41 = vector.broadcast %40 : f32 to vector<1x1xf32>
    %c0_19 = arith.constant 0 : index
    %c0_20 = arith.constant 0 : index
    %c0_21 = arith.constant 0 : index
    %42 = vector.load %arg5[%c0_19, %c0_20, %c0_21] : memref<1x1x1xf32, #tpu.memory_space<vmem>>, vector<1x1x1xf32>
    %43 = vector.shape_cast %42 : vector<1x1x1xf32> to vector<1x1xf32>
    %44 = vector.shape_cast %41 : vector<1x1xf32> to vector<1x1x1xf32>
    tpu.vector_store %arg5[%c0_19, %c0_20, %c0_21], %44 {strides = array<i32>} : memref<1x1x1xf32, #tpu.memory_space<vmem>>, vector<1x1x1xf32>,
    return
  }
  func.func @transform_0(%arg0: i32) -> (i32, i32) {
    %c0_i32 = arith.constant 0 : i32
    %c0_i32_0 = arith.constant 0 : i32
    return %arg0, %c0_i32 : i32, i32
  }
  func.func @transform_1(%arg0: i32) -> (i32, i32) {
    %c0_i32 = arith.constant 0 : i32
    %c0_i32_0 = arith.constant 0 : i32
    return %arg0, %c0_i32 : i32, i32
  }
  func.func @transform_2(%arg0: i32) -> (i32, i32) {
    %c0_i32 = arith.constant 0 : i32
    %c0_i32_0 = arith.constant 0 : i32
    %c0_i32_1 = arith.constant 0 : i32
    return %c0_i32, %c0_i32_0 : i32, i32
  }
  func.func @transform_3(%arg0: i32) -> (i32, i32) {
    %c0_i32 = arith.constant 0 : i32
    %c0_i32_0 = arith.constant 0 : i32
    %c0_i32_1 = arith.constant 0 : i32
    return %c0_i32, %c0_i32_0 : i32, i32
  }
  func.func @transform_4(%arg0: i32) -> (i32, i32, i32) {
    %c0_i32 = arith.constant 0 : i32
    %c0_i32_0 = arith.constant 0 : i32
    %c0_i32_1 = arith.constant 0 : i32
    return %arg0, %c0_i32, %c0_i32_0 : i32, i32, i32
  }
}

</mosaic_0001>

<bundles_post_ra>
// kernel: tpu_custom_call.1
= control target key start
LH: loop header
LB: loop body
LE: loop exit
PB: predicated region body
PF: predicated region fallthrough
CT: control target
= control target key end

     0   :  { %9 = vsyncpa [#allocation3], 0  ;;  %s908_s0 = inlined_call_operand.vmem [shape: f32[24,257], index: 0, kind: input, shape index: {}]   ;;  %s909_s1 = inlined_call_operand.hbm [shape: f32[24,257], index: 1, kind: input, shape index: {}]   ;;  %s910_s2 = inlined_call_operand.hbm [shape: f32[257,112], index: 2, kind: input, shape index: {}]   ;;  %s911_s3 = inlined_call_operand.vmem [shape: f32[112,3], index: 3, kind: input, shape index: {}]   ;;  %s912_s4 = inlined_call_operand.hbm [shape: f32[1,1,1], index: 4, kind: output, shape index: {}]  }
   0x1   :  { %10 = vsyncpa [#allocation6], 0 }
   0x2   :  { %11 = vsyncpa [#allocation4], 0  ;;  %s761_s15 = smov [#allocation2]  }
   0x3   :  { %s19_s16 = sshll.u32 %s761_s15, 4  ;;  %s20_s16 = int_to_ptr.vmem [resolvable:$true] %s19_s16 }
   0x4   :  { %s703_s17 = scalar_lea.vmem %s20_s16, 1152  ;;  %p708_p1 = scmp.lt.s32.totalorder %s20_s16, %s20_s16 }
   0x5   :  { %p704_p0 = scmp.ne.s32.totalorder %s20_s16, %s703_s17  ;;  %p709_p2 = scmp.lt.s32.totalorder %s703_s17, %s703_s17 }
   0x7   :  { %p710_p3 = por %p709_p2, %p708_p1 }
   0x9   :  { %p711_p4 = pnand %p710_p3, %p704_p0 }
   0xb   :  { %714 = shalt.err (!%p711_p4)
}
   0xc   :  { %s762_s18 = smov 384   ;;  %s763_s19 = smov 24  }
   0xd   :  { %25 = dma.hbm_to_vmem [thread:$0]  %s909_s1, 1152, %s20_s16, [#allocation3], %s762_s18, %s762_s18, %s763_s19  }
   0xe   :  { %s764_s22 = smov [#allocation5]  }
   0xf   :  { %s31_s23 = sshll.u32 %s764_s22, 4  ;;  %s32_s23 = int_to_ptr.vmem [resolvable:$true] %s31_s23 }
  0x10   :  { %s723_s24 = scalar_lea.vmem %s32_s23, 4224  ;;  %p728_p6 = scmp.lt.s32.totalorder %s32_s23, %s32_s23 }
  0x11   :  { %p724_p5 = scmp.ne.s32.totalorder %s32_s23, %s723_s24  ;;  %p729_p7 = scmp.lt.s32.totalorder %s723_s24, %s723_s24 }
  0x13   :  { %p730_p8 = por %p729_p7, %p728_p6 }
  0x15   :  { %p731_p9 = pnand %p730_p8, %p724_p5 }
  0x17   :  { %734 = shalt.err (!%p731_p9)
}
  0x18   :  { %s765_s25 = smov 128   ;;  %s766_s26 = smov 8  }
  0x19   :  { %37 = dma.hbm_to_vmem [thread:$0]  %s910_s2, 4224, %s32_s23, [#allocation6], %s765_s25, %s765_s25, %s766_s26  }
  0x1a   :  { %755 = dma.done.wait [#allocation3], 1152  }
  0x1b   :  { %756 = vsyncadd [#allocation3], 4294966144 }
  0x1c   :  { %757 = dma.done.wait [#allocation6], 4224  }
  0x1d   :  { %758 = vsyncadd [#allocation6], 4294963072  ;;  %v767_v0 = vmov 0   ;;  %v77_v1 = vld [vmem:[#allocation5 + $0xf8] sm:$0xff]  ;;  %v76_v3 = vld [vmem:[#allocation5 + $0xf0] sm:$0xff]  ;;  %v768_v51 = vmov 0.0  }
  0x1e   :  { %676 = vset.pattern.permute.xlu1 %v767_v0  ;;  %675 = vset.pattern.permute.xlu0 %v767_v0  ;;  %v61_v2 = vld [vmem:[#allocation5 + $0x78] sm:$0xff]  ;;  %v60_v4 = vld [vmem:[#allocation5 + $0x70] sm:$0xff]  ;;  %v75_v5 = vld [vmem:[#allocation5 + $0xe8] sm:$0xff]  ;;  %vm769_vm0 = vmmov 0   ;;  %vm335_vm1 = vcmask 916480   ;;  %vm461_vm6 = vcmask 23552  }
  0x1f   :  { %499 = vmatprep.subr.mxu0 %v77_v1  ;;  %540 = vmatprep.subr.mxu1 %v77_v1  ;;  %v59_v6 = vld [vmem:[#allocation5 + $0x68] sm:$0xff]  ;;  %v74_v7 = vld [vmem:[#allocation5 + $0xe0] sm:$0xff]  ;;  %v73_v9 = vld [vmem:[#allocation5 + $0xd8] sm:$0xff]  ;;  %vm477_vm10 = vcmask 0  }
  0x20   :  { %500 = vmatpush3.msra.mxu0 %v61_v2  ;;  %541 = vmatpush3.msra.mxu1 %v61_v2  ;;  %v58_v8 = vld [vmem:[#allocation5 + $0x60] sm:$0xff]  ;;  %v57_v10 = vld [vmem:[#allocation5 + $0x58] sm:$0xff]  ;;  %v72_v11 = vld [vmem:[#allocation5 + $0xd0] sm:$0xff] }
  0x21   :  { %501 = vmatprep.subr.mxu0 %v76_v3  ;;  %542 = vmatprep.subr.mxu1 %v76_v3  ;;  %v56_v12 = vld [vmem:[#allocation5 + $0x50] sm:$0xff]  ;;  %v71_v13 = vld [vmem:[#allocation5 + $0xc8] sm:$0xff]  ;;  %v70_v15 = vld [vmem:[#allocation5 + $0xc0] sm:$0xff] }
  0x22   :  { %502 = vmatpush3.msra.mxu0 %v60_v4  ;;  %543 = vmatpush3.msra.mxu1 %v60_v4  ;;  %v55_v14 = vld [vmem:[#allocation5 + $0x48] sm:$0xff]  ;;  %v54_v16 = vld [vmem:[#allocation5 + $0x40] sm:$0xff]  ;;  %v69_v17 = vld [vmem:[#allocation5 + $0xb8] sm:$0xff] }
  0x23   :  { %503 = vmatprep.subr.mxu0 %v75_v5  ;;  %544 = vmatprep.subr.mxu1 %v75_v5  ;;  %v53_v18 = vld [vmem:[#allocation5 + $0x38] sm:$0xff]  ;;  %v68_v19 = vld [vmem:[#allocation5 + $0xb0] sm:$0xff]  ;;  %v67_v21 = vld [vmem:[#allocation5 + $0xa8] sm:$0xff] }
  0x24   :  { %504 = vmatpush3.msra.mxu0 %v59_v6  ;;  %545 = vmatpush3.msra.mxu1 %v59_v6  ;;  %v52_v20 = vld [vmem:[#allocation5 + $0x30] sm:$0xff]  ;;  %v51_v22 = vld [vmem:[#allocation5 + $0x28] sm:$0xff]  ;;  %v66_v23 = vld [vmem:[#allocation5 + $0xa0] sm:$0xff] }
  0x25   :  { %505 = vmatprep.subr.mxu0 %v74_v7  ;;  %546 = vmatprep.subr.mxu1 %v74_v7  ;;  %v50_v24 = vld [vmem:[#allocation5 + $0x20] sm:$0xff]  ;;  %v65_v25 = vld [vmem:[#allocation5 + $0x98] sm:$0xff]  ;;  %v64_v27 = vld [vmem:[#allocation5 + $0x90] sm:$0xff] }
  0x26   :  { %506 = vmatpush3.msra.mxu0 %v58_v8  ;;  %547 = vmatpush3.msra.mxu1 %v58_v8  ;;  %v49_v26 = vld [vmem:[#allocation5 + $0x18] sm:$0xff]  ;;  %v48_v28 = vld [vmem:[#allocation5 + $0x10] sm:$0xff]  ;;  %v63_v29 = vld [vmem:[#allocation5 + $0x88] sm:$0xff] }
  0x27   :  { %507 = vmatprep.subr.mxu0 %v73_v9  ;;  %548 = vmatprep.subr.mxu1 %v73_v9  ;;  %v47_v30 = vld [vmem:[#allocation5 + $0x8] sm:$0xff]  ;;  %v62_v31 = vld [vmem:[#allocation5 + $0x80] sm:$0xff]  ;;  %v79_v35 = vld [vmem:[%s908_s0] sm:$0xff] }
  0x28   :  { %508 = vmatpush3.msra.mxu0 %v57_v10  ;;  %549 = vmatpush3.msra.mxu1 %v57_v10  ;;  %v46_v32 = vld [vmem:[#allocation5] sm:$0xff]  ;;  %v85_v36 = vld [vmem:[#allocation2] sm:$0xff]  ;;  %v91_v40 = vld [vmem:[%s908_s0 + $0x10] sm:$0xff] }
  0x29   :  { %509 = vmatprep.subr.mxu0 %v72_v11  ;;  %550 = vmatprep.subr.mxu1 %v72_v11  ;;  %v80_v33 = vld [vmem:[%s908_s0 + $0x8] sm:$0xff]  ;;  %v82_v37 = vld [vmem:[%s908_s0 + $0x20] sm:$0xff]  ;;  %v81_v41 = vld [vmem:[%s908_s0 + $0x18] sm:$0xff] }
  0x2a   :  { %510 = vmatpush3.msra.mxu0 %v56_v12  ;;  %551 = vmatpush3.msra.mxu1 %v56_v12  ;;  %v86_v34 = vld [vmem:[#allocation2 + $0x8] sm:$0xff]  ;;  %v88_v38 = vld [vmem:[#allocation2 + $0x20] sm:$0xff]  ;;  %v87_v42 = vld [vmem:[#allocation2 + $0x18] sm:$0xff] }
  0x2b   :  { %511 = vmatprep.subr.mxu0 %v71_v13  ;;  %552 = vmatprep.subr.mxu1 %v71_v13  ;;  %v92_v39 = vld [vmem:[%s908_s0 + $0x28] sm:$0xff]  ;;  %v84_v43 = vld [vmem:[%s908_s0 + $0x38] sm:$0xff]  ;;  %v94_v46 = vld [vmem:[#allocation2 + $0x10] sm:$0xff] }
  0x2c   :  { %512 = vmatpush3.msra.mxu0 %v55_v14  ;;  %553 = vmatpush3.msra.mxu1 %v55_v14  ;;  %v90_v44 = vld [vmem:[#allocation2 + $0x38] sm:$0xff]  ;;  %v95_v45 = vld [vmem:[#allocation2 + $0x28] sm:$0xff]  ;;  %v83_v47 = vld [vmem:[%s908_s0 + $0x30] sm:$0xff] }
  0x2d   :  { %513 = vmatprep.subr.mxu0 %v70_v15  ;;  %554 = vmatprep.subr.mxu1 %v70_v15  ;;  %v89_v48 = vld [vmem:[#allocation2 + $0x30] sm:$0xff]  ;;  %v93_v49 = vld [vmem:[%s908_s0 + $0x40] sm:$0xff]  ;;  %v334_v52 = vld [vmem:[%s911_s3 + $0x68] sm:$0xff] }
  0x2e   :  { %514 = vmatpush3.msra.mxu0 %v54_v16  ;;  %555 = vmatpush3.msra.mxu1 %v54_v16  ;;  %v96_v50 = vld [vmem:[#allocation2 + $0x40] sm:$0xff]  ;;  %v332_v54 = vld [vmem:[%s911_s3 + $0x58] sm:$0xff]  ;;  %v331_v55 = vld [vmem:[%s911_s3 + $0x50] sm:$0xff] }
  0x2f   :  { %515 = vmatprep.subr.mxu0 %v69_v17  ;;  %556 = vmatprep.subr.mxu1 %v69_v17  ;;  %v333_v53 = vld [vmem:[%s911_s3 + $0x60] sm:$0xff]  ;;  %v330_v56 = vld [vmem:[%s911_s3 + $0x48] sm:$0xff]  ;;  %v328_v58 = vld [vmem:[%s911_s3 + $0x38] sm:$0xff] }
  0x30   :  { %516 = vmatpush3.msra.mxu0 %v53_v18  ;;  %557 = vmatpush3.msra.mxu1 %v53_v18  ;;  %v329_v57 = vld [vmem:[%s911_s3 + $0x40] sm:$0xff]  ;;  %v327_v59 = vld [vmem:[%s911_s3 + $0x30] sm:$0xff]  ;;  %v326_v60 = vld [vmem:[%s911_s3 + $0x28] sm:$0xff] }
  0x31   :  { %517 = vmatprep.subr.mxu0 %v68_v19  ;;  %558 = vmatprep.subr.mxu1 %v68_v19  ;;  %v325_v61 = vld [vmem:[%s911_s3 + $0x20] sm:$0xff]  ;;  %v324_v62 = vld [vmem:[%s911_s3 + $0x18] sm:$0xff]  ;;  %v323_v63 = vld [vmem:[%s911_s3 + $0x10] sm:$0xff] }
  0x32   :  { %518 = vmatpush3.msra.mxu0 %v52_v20  ;;  %559 = vmatpush3.msra.mxu1 %v52_v20  ;;  %v322_v0 = vld [vmem:[%s911_s3 + $0x8] sm:$0xff]  ;;  %v321_v1 = vld [vmem:[%s911_s3] sm:$0xff]  ;;  %s770_s3 = smov [#allocation7]  }
  0x33   :  { %519 = vmatprep.subr.mxu0 %v67_v21  ;;  %560 = vmatprep.subr.mxu1 %v67_v21  ;;  %v495_v4 = vld [vmem:[#allocation5 + $0x100] ss:$0 sm:$0xff]  ;;  %s485_s18 = sshll.u32 %s770_s3, 4  ;;  %s486_s18 = int_to_ptr.vmem [resolvable:$true] %s485_s18 }
  0x34   :  { %520 = vmatpush3.msra.mxu0 %v51_v22  ;;  %561 = vmatpush3.msra.mxu1 %v51_v22  ;;  %s735_s20 = scalar_lea.vmem %s486_s18, 16  ;;  %s739_s21 = scalar_lea.vmem %s486_s18, 32 }
  0x35   :  { %521 = vmatprep.subr.mxu0 %v66_v23  ;;  %562 = vmatprep.subr.mxu1 %v66_v23  ;;  %p736_p10 = scmp.ne.s32.totalorder %s486_s18, %s735_s20  ;;  %p740_p11 = scmp.lt.s32.totalorder %s486_s18, %s486_s18 }
  0x36   :  { %522 = vmatpush3.msra.mxu0 %v50_v24  ;;  %563 = vmatpush3.msra.mxu1 %v50_v24  ;;  %p741_p12 = scmp.lt.s32.totalorder %s739_s21, %s735_s20 }
  0x37   :  { %523 = vmatprep.subr.mxu0 %v65_v25  ;;  %564 = vmatprep.subr.mxu1 %v65_v25 }
  0x38   :  { %524 = vmatpush3.msra.mxu0 %v49_v26  ;;  %565 = vmatpush3.msra.mxu1 %v49_v26  ;;  %p742_p13 = por %p741_p12, %p740_p11 }
  0x39   :  { %525 = vmatprep.subr.mxu0 %v64_v27  ;;  %566 = vmatprep.subr.mxu1 %v64_v27 }
  0x3a   :  { %526 = vmatpush3.msra.mxu0 %v48_v28  ;;  %567 = vmatpush3.msra.mxu1 %v48_v28  ;;  %p743_p0 = pnand %p742_p13, %p736_p10 }
  0x3b   :  { %527 = vmatprep.subr.mxu0 %v63_v29  ;;  %568 = vmatprep.subr.mxu1 %v63_v29 }
  0x3c   :  { %528 = vmatpush3.msra.mxu0 %v47_v30  ;;  %569 = vmatpush3.msra.mxu1 %v47_v30 }
  0x3d   :  { %529 = vmatprep.subr.mxu0 %v62_v31  ;;  %570 = vmatprep.subr.mxu1 %v62_v31 }
  0x3e   :  { %530 = vmatpush3.msra.mxu0 %v46_v32  ;;  %183 = vmatprep.mubr.f32.mxu0 %v80_v33 }
  0x3f   :  { %571 = vmatpush3.msra.mxu1 %v46_v32  ;;  %281 = vmatprep.mubr.f32.mxu1 %v86_v34 }
  0x40   :  { %184 = vmatmul.mubr.f32.vlgmr.msra.gmra.mxu0 %v79_v35  ;;  %282 = vmatmul.mubr.f32.vlgmr.msra.gmra.mxu1 %v85_v36 }
  0x41   :  { %188 = vmatprep.mubr.f32.mxu0 %v82_v37  ;;  %286 = vmatprep.mubr.f32.mxu1 %v88_v38 }
  0x42   :  { %104 = vperm.xlu0 %675, %v92_v39   ;;  %99 = vperm.xlu1 %676, %v91_v40  }
  0x43   :  { %598 = vmatprep.subr.mxu0 %v768_v51  ;;  %635 = vmatprep.subr.mxu1 %v768_v51 }
  0x44   :  { %189 = vmatmul.mubr.f32.gmra.mxu0 %v81_v41  ;;  %287 = vmatmul.mubr.f32.gmra.mxu1 %v87_v42 }
  0x45   :  { %193 = vmatprep.mubr.f32.mxu0 %v84_v43  ;;  %291 = vmatprep.mubr.f32.mxu1 %v90_v44 }
  0x46   :  { %206 = vperm.xlu0 %675, %v95_v45   ;;  %201 = vperm.xlu1 %676, %v94_v46  }
  0x47   :  { %599 = vmatpush3.msra.mxu0 %v334_v52  ;;  %649 = vmatpush3.msra.mxu1 %v334_v52 }
  0x48   :  { %194 = vmatmul.mubr.f32.gmra.mxu0 %v83_v47  ;;  %292 = vmatmul.mubr.f32.gmra.mxu1 %v89_v48 }
  0x49   :  { %600 = vmatprep.subr.mxu0 %v768_v51  ;;  %636 = vmatprep.subr.mxu1 %v768_v51 }
  0x4a   :  { %109 = vperm.xlu0 %675, %v93_v49   ;;  %211 = vperm.xlu1 %676, %v96_v50  }
  0x4b   :  { %601 = vmatpush3.msra.mxu0 %v333_v53  ;;  %650 = vmatpush3.msra.mxu1 %v333_v53 }
  0x4c   :  { %602 = vmatprep.subr.mxu0 %v768_v51  ;;  %637 = vmatprep.subr.mxu1 %v768_v51 }
  0x4d   :  { %603 = vmatpush3.msra.mxu0 %v332_v54  ;;  %651 = vmatpush3.msra.mxu1 %v332_v54 }
  0x4e   :  { %604 = vmatprep.subr.mxu0 %v768_v51  ;;  %638 = vmatprep.subr.mxu1 %v768_v51 }
  0x4f   :  { %605 = vmatpush3.msra.mxu0 %v331_v55  ;;  %652 = vmatpush3.msra.mxu1 %v331_v55 }
  0x50   :  { %606 = vmatprep.subr.mxu0 %v768_v51  ;;  %639 = vmatprep.subr.mxu1 %v768_v51 }
  0x51   :  { %607 = vmatpush3.msra.mxu0 %v330_v56  ;;  %653 = vmatpush3.msra.mxu1 %v330_v56 }
  0x52   :  { %608 = vmatprep.subr.mxu0 %v768_v51  ;;  %640 = vmatprep.subr.mxu1 %v768_v51 }
  0x53   :  { %609 = vmatpush3.msra.mxu0 %v329_v57  ;;  %654 = vmatpush3.msra.mxu1 %v329_v57 }
  0x54   :  { %610 = vmatprep.subr.mxu0 %v768_v51  ;;  %641 = vmatprep.subr.mxu1 %v768_v51 }
  0x55   :  { %611 = vmatpush3.msra.mxu0 %v328_v58  ;;  %655 = vmatpush3.msra.mxu1 %v328_v58 }
  0x56   :  { %612 = vmatprep.subr.mxu0 %v768_v51  ;;  %642 = vmatprep.subr.mxu1 %v768_v51 }
  0x57   :  { %613 = vmatpush3.msra.mxu0 %v327_v59  ;;  %656 = vmatpush3.msra.mxu1 %v327_v59 }
  0x58   :  { %614 = vmatprep.subr.mxu0 %v768_v51  ;;  %643 = vmatprep.subr.mxu1 %v768_v51 }
  0x59   :  { %615 = vmatpush3.msra.mxu0 %v326_v60  ;;  %657 = vmatpush3.msra.mxu1 %v326_v60 }
  0x5a   :  { %616 = vmatprep.subr.mxu0 %v768_v51  ;;  %644 = vmatprep.subr.mxu1 %v768_v51 }
  0x5b   :  { %617 = vmatpush3.msra.mxu0 %v325_v61  ;;  %658 = vmatpush3.msra.mxu1 %v325_v61 }
  0x5c   :  { %618 = vmatprep.subr.mxu0 %v768_v51  ;;  %645 = vmatprep.subr.mxu1 %v768_v51 }
  0x5d   :  { %619 = vmatpush3.msra.mxu0 %v324_v62  ;;  %659 = vmatpush3.msra.mxu1 %v324_v62 }
  0x5e   :  { %620 = vmatprep.subr.mxu0 %v768_v51  ;;  %646 = vmatprep.subr.mxu1 %v768_v51 }
  0x5f   :  { %621 = vmatpush3.msra.mxu0 %v323_v63  ;;  %660 = vmatpush3.msra.mxu1 %v323_v63 }
  0x60   :  { %622 = vmatprep.subr.mxu0 %v768_v51  ;;  %647 = vmatprep.subr.mxu1 %v768_v51 }
  0x61   :  { %623 = vmatpush3.msra.mxu0 %v322_v0  ;;  %661 = vmatpush3.msra.mxu1 %v322_v0 }
  0x62   :  { %624 = vmatprep.subr.mxu0 %v768_v51  ;;  %648 = vmatprep.subr.mxu1 %v768_v51 }
  0x63   :  { %625 = vmatpush3.msra.mxu0 %v321_v1  ;;  %626 = vmatprep.mubr.msk.f32.mxu0 %vm769_vm0, %v768_v51 }
  0x64   :  { %662 = vmatpush3.msra.mxu1 %v321_v1  ;;  %629 = vmatprep.mubr.msk.f32.mxu1 %vm769_vm0, %v768_v51 }
  0xbd   :  { %v100_v2 = vpop.permute.xlu1 %99  ;;  %v105_v3 = vpop.permute.xlu0 %104 }
  0xbe   :  { %v116_v8 = vmul.f32 %v495_v4, %v100_v2  ;;  %v117_v19 = vmul.f32 %v495_v4, %v105_v3 }
  0xc1   :  { %v202_v5 = vpop.permute.xlu1 %201  ;;  %v207_v9 = vpop.permute.xlu0 %206 }
  0xc2   :  { %v214_v10 = vmul.f32 %v495_v4, %v202_v5  ;;  %v215_v20 = vmul.f32 %v495_v4, %v207_v9  ;;  %v447_v9 = vlaneseq }
  0xc5   :  { %v110_v23 = vpop.permute.xlu0 %109  ;;  %v212_v24 = vpop.permute.xlu1 %211 }
  0xc6   :  { %v118_v33 = vmul.f32 %v495_v4, %v110_v23  ;;  %v216_v34 = vmul.f32 %v495_v4, %v212_v24 }
 0x100   :  { %v531_v6 = vpop.f32.mrf.mxu0  ;;  %v572_v7 = vpop.f32.mrf.mxu1 }
 0x102   :  { %v532_v11 = vpop.f32.mrf.mxu0  ;;  %v573_v12 = vpop.f32.mrf.mxu1 }
 0x103   :  { %v533_v13 = vadd.f32 %v532_v11, %v531_v6  ;;  %v574_v14 = vadd.f32 %v573_v12, %v572_v7  ;;  %v448_v12 = vshrl.u32 %v447_v9, 7 }
 0x104   :  { %v534_v15 = vpop.f32.mrf.mxu0  ;;  %v575_v16 = vpop.f32.mrf.mxu1 }
 0x105   :  { %v186_v17 = vadd.f32 %v533_v13, %v116_v8  ;;  %v284_v18 = vadd.f32 %v574_v14, %v214_v10 }
 0x106   :  { %v535_v21 = vpop.f32.mrf.mxu0  ;;  %v576_v22 = vpop.f32.mrf.mxu1 }
 0x107   :  { %v306_v25 = vadd.f32 1e-07, %v186_v17  ;;  %v297_v26 = vadd.f32 1e-07, %v284_v18  ;;  %v536_v27 = vadd.f32 %v535_v21, %v534_v15  ;;  %v577_v28 = vadd.f32 %v576_v22, %v575_v16 }
 0x108   :  { %v537_v29 = vpop.f32.mrf.mxu0  ;;  %v578_v30 = vpop.f32.mrf.mxu1  ;;  %v450_v16 = vadd.s32 16, %v448_v12 }
 0x109   :  { %677 = vlog2.f32 %v306_v25  ;;  %v191_v31 = vadd.f32 %v536_v27, %v117_v19  ;;  %v289_v32 = vadd.f32 %v577_v28, %v215_v20 }
 0x10a   :  { %679 = vlog2.f32 %v297_v26  ;;  %v538_v35 = vpop.f32.mrf.mxu0  ;;  %v579_v36 = vpop.f32.mrf.mxu1  ;;  %vm457_vm8 = vcmp.lt.s32.totalorder %v450_v16, 18 }
 0x10b   :  { %v307_v37 = vadd.f32 1e-07, %v191_v31  ;;  %v298_v38 = vadd.f32 1e-07, %v289_v32  ;;  %v539_v39 = vadd.f32 %v538_v35, %v537_v29  ;;  %v580_v40 = vadd.f32 %v579_v36, %v578_v30 }
 0x10d   :  { %681 = vlog2.f32 %v307_v37  ;;  %v196_v41 = vadd.f32 %v539_v39, %v118_v33  ;;  %v294_v42 = vadd.f32 %v580_v40, %v216_v34 }
 0x10e   :  { %683 = vlog2.f32 %v298_v38 }
 0x10f   :  { %v308_v43 = vadd.f32 1e-07, %v196_v41  ;;  %v299_v44 = vadd.f32 1e-07, %v294_v42 }
 0x111   :  { %685 = vlog2.f32 %v308_v43 }
 0x112   :  { %687 = vlog2.f32 %v299_v44 }
 0x116   :  { %v678_v45 = vpop.eup %677 }
 0x117   :  { %v680_v46 = vpop.eup %679  ;;  %v310_v47 = vmul.f32 0.6931472, %v678_v45 }
 0x118   :  { %v301_v48 = vmul.f32 0.6931472, %v680_v46 }
 0x11a   :  { %v682_v49 = vpop.eup %681  ;;  %v315_v50 = vsub.f32 %v301_v48, %v310_v47 }
 0x11b   :  { %v684_v52 = vpop.eup %683  ;;  %v312_v53 = vmul.f32 0.6931472, %v682_v49 }
 0x11c   :  { %v318_v54 = vmul.f32 %v315_v50, %v315_v50  ;;  %v303_v55 = vmul.f32 0.6931472, %v684_v52 }
 0x11e   :  { %v686_v56 = vpop.eup %685  ;;  %v316_v57 = vsub.f32 %v303_v55, %v312_v53  ;;  %627 = vmatmul.mubr.msk.f32.vlgmr.msra.gmra.mxu0 %vm335_vm1, %v318_v54 }
 0x11f   :  { %v688_v58 = vpop.eup %687  ;;  %v314_v59 = vmul.f32 0.6931472, %v686_v56 }
 0x120   :  { %v319_v60 = vmul.f32 %v316_v57, %v316_v57  ;;  %v305_v61 = vmul.f32 0.6931472, %v688_v58 }
 0x122   :  { %630 = vmatmul.mubr.msk.f32.vlgmr.msra.gmra.mxu1 %vm335_vm1, %v319_v60  ;;  %v317_v62 = vsub.f32 %v305_v61, %v314_v59 }
 0x123   :  { %632 = vmatprep.mubr.msk.f32.mxu1 %vm769_vm0, %v768_v51 }
 0x124   :  { %v320_v63 = vmul.f32 %v317_v62, %v317_v62 }
 0x126   :  { %633 = vmatmul.mubr.msk.f32.gmra.mxu1 %vm335_vm1, %v320_v63 }
 0x1de   :  { %v411_v0 = vpop.f32.mrf.mxu0 }
 0x1df   :  { %v412_v1 = vadd.f32 1e-07, %v411_v0 }
 0x1e0   :  { %v628_v2 = vpop.f32.mrf.mxu0 }
 0x1e1   :  { %689 = vrsqrt.f32 %v412_v1  ;;  %vm427_vm2 = vcmp.eq.f32.partialorder %v412_v1, inf  ;;  %v430_v17 = vand.u32 2147483648, %v412_v1  ;;  %vm429_vm5 = vcmp.eq.f32.partialorder %v412_v1, 0.0 }
 0x1e2   :  { %v416_v3 = vpop.f32.mrf.mxu1 }
 0x1e3   :  { %v417_v4 = vadd.f32 1e-07, %v416_v3 }
 0x1e4   :  { %v631_v5 = vpop.f32.mrf.mxu1 }
 0x1e5   :  { %691 = vrsqrt.f32 %v417_v4  ;;  %vm434_vm3 = vcmp.eq.f32.partialorder %v417_v4, inf  ;;  %v437_v15 = vand.u32 2147483648, %v417_v4  ;;  %vm436_vm4 = vcmp.eq.f32.partialorder %v417_v4, 0.0 }
 0x1e6   :  { %v421_v6 = vpop.f32.mrf.mxu1 }
 0x1e7   :  { %v422_v7 = vadd.f32 1e-07, %v421_v6 }
 0x1e8   :  { %v634_v8 = vpop.f32.mrf.mxu1 }
 0x1e9   :  { %693 = vrsqrt.f32 %v422_v7  ;;  %vm441_vm7 = vcmp.eq.f32.partialorder %v422_v7, inf  ;;  %v444_v23 = vand.u32 2147483648, %v422_v7  ;;  %vm443_vm9 = vcmp.eq.f32.partialorder %v422_v7, 0.0 }
 0x1ee   :  { %v690_v10 = vpop.eup %689 }
 0x1ef   :  { %v426_v11 = vmul.f32 %v690_v10, %v412_v1 }
 0x1f1   :  { %v428_v14 = vsel %vm427_vm2, %v412_v1, %v426_v11 }
 0x1f2   :  { %v692_v13 = vpop.eup %691  ;;  %v431_v21 = vsel %vm429_vm5, %v430_v17, %v428_v14 }
 0x1f3   :  { %v433_v51 = vmul.f32 %v692_v13, %v417_v4  ;;  %v462_v27 = vsel %vm461_vm6, %v431_v21, 0.0 }
 0x1f5   :  { %v435_v18 = vsel %vm434_vm3, %v417_v4, %v433_v51 }
 0x1f6   :  { %v694_v19 = vpop.eup %693  ;;  %v438_v20 = vsel %vm436_vm4, %v437_v15, %v435_v18 }
 0x1f7   :  { %v440_v22 = vmul.f32 %v694_v19, %v422_v7  ;;  %v463_v24 = vsel %vm461_vm6, %v438_v20, 0.0 }
 0x1f8   :  { %v464_v29 = vadd.f32 %v463_v24, %v462_v27 }
 0x1f9   :  { %v442_v25 = vsel %vm441_vm7, %v422_v7, %v440_v22 }
 0x1fa   :  { %v445_v26 = vsel %vm443_vm9, %v444_v23, %v442_v25 }
 0x1fb   :  { %v460_v28 = vsel %vm457_vm8, %v445_v26, 0.0 }
 0x1fc   :  { %v465_v30 = vsel %vm461_vm6, %v460_v28, 0.0 }
 0x1fd   :  { %v466_v31 = vadd.f32 %v465_v30, %v464_v29 }
 0x1ff   :  { %467 = vadd.xlane.f32.xlu0 %v466_v31 }
 0x288   :  { %v468_v32 = vpop.xlane.xlu0 %467 }
 0x289   :  { %v469_v33 = vrot.slane %v468_v32, 4 }
 0x28b   :  { %v470_v34 = vadd.f32 %v469_v33, %v468_v32 }
 0x28d   :  { %v471_v35 = vrot.slane %v470_v34, 2 }
 0x28f   :  { %v472_v36 = vadd.f32 %v471_v35, %v470_v34 }
 0x291   :  { %v473_v37 = vrot.slane %v472_v36, 1 }
 0x293   :  { %v474_v38 = vadd.f32 %v473_v37, %v472_v36 }
 0x295   :  { %663 = vpush %v474_v38 }
 0x2c6   :  { %s664_s19 = spop %663 }
 0x2c7   :  { %v476_v39 = vstv %s664_s19 }
 0x2c8   :  { %478 = vst.msk [vmem:[#allocation7] sm:$0x1] %vm477_vm10, %v476_v39 }
 0x2c9   :  { %746 = shalt.err (!%p743_p0)
}
 0x2ca   :  { %488 = dma.vmem_to_hbm [thread:$0]  %s486_s18, 16, %s912_s4, [#allocation4]  }
 0x2cb   :  { %759 = dma.done.wait [#allocation4], 16  }
 0x2cc   :  { %760 = vsyncadd [#allocation4], 4294967280 }
 0x2cd   :  { %492 = vsyncpa [#allocation3], 1 }
 0x2ce   :  { %493 = vsyncpa [#allocation6], 1 }
 0x2cf   :  { %494 = vsyncpa [#allocation4], 1 }

</bundles_post_ra>
